<compile_context>
chip_gen: v6e
topology: v6e:2x2x1
jax: 0.10.0
libtpu: 0.0.40
codegen_flags: <defaults>
</compile_context>

<pallas_src>
import jax
import jax.numpy as jnp
import numpy as np
from jax.experimental import pallas as pl
from jax.experimental.pallas import tpu as pltpu


def build_hgcn_kernel(meta):
    """Fused 2-layer HGCN kernel body (all node types, both layers, one call)."""
    n_nodes = meta["n_nodes"]          # real node count per node type
    rel_of_src = meta["rel_of_src"]    # per src type: list of (rel_idx, dst_type)
    row_off = meta["row_off"]          # per relation: row offset in dst scratch
    sum_ns_pad = meta["sum_ns_pad"]    # per dst type: padded packed-K extent
    hid_pad = meta["hid_pad"]
    out_pad = meta["out_pad"]
    n_nt = len(n_nodes)

    def kernel(*refs):
        i = 0
        x_refs = refs[i:i + n_nt]; i += n_nt       # padded node features, bf16
        a_refs = refs[i:i + n_nt]; i += n_nt       # per-dst concat normalized adjacency, bf16
        w1_refs = refs[i:i + n_nt]; i += n_nt      # layer-1 per-SOURCE packed weights, bf16
        w2_refs = refs[i:i + n_nt]; i += n_nt      # layer-2 per-SOURCE packed weights, bf16
        b1_refs = refs[i:i + n_nt]; i += n_nt      # layer-1 per-dst bias sums, f32 (1, hid_pad)
        b2_refs = refs[i:i + n_nt]; i += n_nt      # layer-2 per-dst bias sums, f32 (1, out_pad)
        out_refs = refs[i:i + n_nt]; i += n_nt     # outputs, f32 (N_t, out_pad)
        z_refs = refs[i:i + n_nt]; i += n_nt       # bf16 packed-source scratch (sum_ns_pad, hid_pad)
        h1_refs = refs[i:i + n_nt]                 # bf16 post-ReLU hidden scratch (N_t, hid_pad)

        # Zero-init packed scratch ONCE: padded rows (and K-alignment rows) must be
        # exact zeros (their a_cat columns are zero-padded in glue); scratch is
        # otherwise uninitialized VMEM.  Row layout is identical for both layers.
        for t in range(n_nt):
            z_refs[t][...] = jnp.zeros_like(z_refs[t])

        def hetero_layer(feat_of, wcat_refs, b_refs, width, store):
            # (1) per-SOURCE packed transform: ONE MXU dot per source type;
            #     128-aligned column blocks of the f32 result go straight into the
            #     bf16 per-destination scratch (no f32 round-trip, no cast pass).
            for s in range(n_nt):
                z_s = jnp.dot(feat_of(s), wcat_refs[s][...],
                              preferred_element_type=jnp.float32)
                for j, (r, d) in enumerate(rel_of_src[s]):
                    z_refs[d][pl.ds(row_off[r], n_nodes[s]), pl.ds(0, width)] = (
                        z_s[:, j * width:(j + 1) * width].astype(jnp.bfloat16))
            # (2) per-DST fused aggregation over ALL incoming relations: ONE MXU dot.
            for t in range(n_nt):
                zb = z_refs[t][pl.ds(0, sum_ns_pad[t]), pl.ds(0, width)]
                h = jnp.dot(a_refs[t][...], zb,
                            preferred_element_type=jnp.float32) + b_refs[t][...]
                store(t, h)

        def store_h1(t, h):                        # conv1 epilogue: ReLU -> bf16 staging
            h1_refs[t][...] = jnp.maximum(h, 0.0).astype(jnp.bfloat16)

        def store_out(t, h):                       # conv2 epilogue: f32 module output
            out_refs[t][...] = h

        hetero_layer(lambda s: x_refs[s][...], w1_refs, b1_refs, hid_pad, store_h1)
        hetero_layer(lambda s: h1_refs[s][...], w2_refs, b2_refs, out_pad, store_out)

    return kernel


def hgcn_forward(x_bf, a_cat_bf, w1cat_bf, w2cat_bf, b1_sum, b2_sum, meta):
    n_nt = len(meta["n_nodes"])
    assert meta["out_pad"] <= meta["hid_pad"], "scratch lanes reused across layers"
    inputs = (*x_bf, *a_cat_bf, *w1cat_bf, *w2cat_bf, *b1_sum, *b2_sum)
    out_shape = tuple(
        jax.ShapeDtypeStruct((meta["n_nodes"][t], meta["out_pad"]), jnp.float32)
        for t in range(n_nt))
    scratch = (
        [pltpu.VMEM((meta["sum_ns_pad"][t], meta["hid_pad"]), jnp.bfloat16)
         for t in range(n_nt)]                       # packed-source bf16 scratch
        + [pltpu.VMEM((meta["n_nodes"][t], meta["hid_pad"]), jnp.bfloat16)
           for t in range(n_nt)])                    # post-ReLU bf16 hidden scratch

    # Advisory cost estimate for XLA's scheduler around the fused custom call.
    flops = 0
    for s in range(n_nt):
        nrs = len(meta["rel_of_src"][s])
        flops += 2 * meta["n_nodes"][s] * meta["in_pad"] * nrs * meta["hid_pad"]
        flops += 2 * meta["n_nodes"][s] * meta["hid_pad"] * nrs * meta["out_pad"]
    for t in range(n_nt):
        flops += 2 * meta["n_nodes"][t] * meta["sum_ns_pad"][t] * meta["hid_pad"]
        flops += 2 * meta["n_nodes"][t] * meta["sum_ns_pad"][t] * meta["out_pad"]
    bytes_in = sum(int(v.size) * v.dtype.itemsize for v in inputs)
    bytes_out = sum(meta["n_nodes"][t] * meta["out_pad"] * 4 for t in range(n_nt))

    return pl.pallas_call(
        build_hgcn_kernel(meta),
        out_shape=out_shape,
        in_specs=[pl.BlockSpec(memory_space=pltpu.VMEM)] * len(inputs),
        out_specs=tuple(pl.BlockSpec(memory_space=pltpu.VMEM) for _ in range(n_nt)),
        scratch_shapes=scratch,
        compiler_params=pltpu.CompilerParams(
            vmem_limit_bytes=48 * 1024 * 1024),      # explicit budget, headroom on v7x (64 MiB)
        cost_estimate=pl.CostEstimate(flops=int(flops), transcendentals=0,
                                      bytes_accessed=int(bytes_in + bytes_out)),
    )(*inputs)


def reference_forward(x_bf, a_cat_bf, w1cat_bf, w2cat_bf, b1_sum, b2_sum, meta):
    """Pure-JAX mirror of the kernel math on the same padded bf16 operands.
    With the bf16 round-trips removed this is exactly the f32 two-layer
    HeteroGraphConv(GraphConv, aggregate='sum') + ReLU forward (zero padding
    contributes exact zeros everywhere)."""
    HI = jax.lax.Precision.HIGHEST
    f32 = lambda v: v.astype(jnp.float32)
    n_nodes = meta["n_nodes"]; ns_pad = meta["ns_pad"]
    incoming = meta["incoming"]; col_idx = meta["col_idx"]
    sum_ns_pad = meta["sum_ns_pad"]
    n_nt = len(n_nodes)

    def layer(feats_bf, wcat_bf, b_sum, width):
        z_src = [jnp.dot(f32(feats_bf[s]), f32(wcat_bf[s]), precision=HI)
                 .astype(jnp.bfloat16) for s in range(n_nt)]
        outs = []
        for t in range(n_nt):
            segs = []
            for (r, s) in incoming[t]:
                j = col_idx[r]
                seg = z_src[s][:, j * width:(j + 1) * width]
                segs.append(jnp.pad(seg, ((0, ns_pad[s] - n_nodes[s]), (0, 0))))
            zcat = jnp.concatenate(segs, axis=0)
            zcat = jnp.pad(zcat, ((0, sum_ns_pad[t] - zcat.shape[0]), (0, 0)))
            outs.append(jnp.dot(f32(a_cat_bf[t]), f32(zcat), precision=HI) + b_sum[t])
        return outs

    h1 = layer(x_bf, w1cat_bf, b1_sum, meta["hid_pad"])
    h1_bf = [jnp.maximum(h, 0.0).astype(jnp.bfloat16) for h in h1]
    return layer(h1_bf, w2cat_bf, b2_sum, meta["out_pad"])


if __name__ == "__main__":
    # ---- sizes (small, consistent with the module) --------------------------
    in_feats, hid_feats, out_feats = 16, 32, 16
    ntypes = ["user", "item"]
    n_nodes = [40, 24]            # deliberately NOT 16-aligned: exercises segment padding

    LANE = 128                    # feature dims padded to 128 lanes (dense vst / MXU N-fill)
    SUBL = 16                     # bf16 sublane pack: per-relation segment rows padded to 16
    KPAD = 128                    # packed contraction padded to 128 (use 256 at scale on v6e/v7x)

    rup = lambda v, m: ((v + m - 1) // m) * m
    in_pad, hid_pad, out_pad = rup(in_feats, LANE), rup(hid_feats, LANE), rup(out_feats, LANE)
    ns_pad = [rup(n, SUBL) for n in n_nodes]

    # relations (the rel_names of the HeteroGraphConv): (name, src_type, dst_type)
    relations = [("follows", 0, 0), ("clicks", 0, 1), ("clicked-by", 1, 0)]
    n_rel, n_nt = len(relations), len(ntypes)
    incoming = [[(r, s) for r, (_nm, s, d) in enumerate(relations) if d == t]
                for t in range(n_nt)]
    rel_of_src = [[(r, d) for r, (_nm, s, d) in enumerate(relations) if s == t]
                  for t in range(n_nt)]
    col_idx = {r: j for s in range(n_nt) for j, (r, _d) in enumerate(rel_of_src[s])}
    # Every node type must both receive and send >=1 relation in this toy schema.
    assert all(incoming[t] for t in range(n_nt)), "dst type with zero incoming relations"
    assert all(rel_of_src[t] for t in range(n_nt)), "src type with zero outgoing relations"
    # TODO(synk): general schemas with isolated node types need a bias-only / skip path per type.

    row_off = [0] * n_rel
    sum_ns_pad = []
    for t in range(n_nt):
        off = 0
        for (r, s) in incoming[t]:
            row_off[r] = off
            off += ns_pad[s]
        sum_ns_pad.append(rup(off, KPAD))

    keys = jax.random.split(jax.random.PRNGKey(0), 17)

    # ---- synthetic graph: dense per-relation adjacency + DGL 'both' norm ----
    def sym_norm(a):                                   # GraphConv(norm='both')
        d_in = jnp.maximum(a.sum(axis=1, keepdims=True), 1.0)    # dst in-degree
        d_out = jnp.maximum(a.sum(axis=0, keepdims=True), 1.0)   # src out-degree
        return a / jnp.sqrt(d_in) / jnp.sqrt(d_out)

    adj_n = []
    for r, (_nm, s, d) in enumerate(relations):
        a = jax.random.bernoulli(keys[r], 0.35,
                                 (n_nodes[d], n_nodes[s])).astype(jnp.float32)
        adj_n.append(sym_norm(a))

    # ---- parameters (per-relation GraphConv weight + bias, both layers) -----
    def xavier(k, shape):
        bound = float(np.sqrt(6.0 / (shape[0] + shape[1])))
        return jax.random.uniform(k, shape, jnp.float32, -bound, bound)

    w1 = [xavier(keys[3 + r], (in_feats, hid_feats)) for r in range(n_rel)]
    w2 = [xavier(keys[6 + r], (hid_feats, out_feats)) for r in range(n_rel)]
    # DGL initializes GraphConv biases to zero; random here for a stronger check.
    b1 = [jax.random.uniform(keys[9 + r], (hid_feats,), jnp.float32, -0.5, 0.5)
          for r in range(n_rel)]
    b2 = [jax.random.uniform(keys[12 + r], (out_feats,), jnp.float32, -0.5, 0.5)
          for r in range(n_rel)]
    x = [jax.random.normal(keys[15 + t], (n_nodes[t], in_feats), jnp.float32)
         for t in range(n_nt)]

    # ---- glue: lane/sublane/K padding, per-source weight packing, ----------
    # ---- per-dst adjacency concat, per-dst bias pre-sum ---------------------
    def pad2(a, rows, cols):
        return jnp.pad(a, ((0, rows - a.shape[0]), (0, cols - a.shape[1])))

    x_pad = [pad2(x[t], n_nodes[t], in_pad) for t in range(n_nt)]
    a_cat = []
    for t in range(n_nt):
        segs = [pad2(adj_n[r], n_nodes[t], ns_pad[s]) for (r, s) in incoming[t]]
        a = jnp.concatenate(segs, axis=1)
        a_cat.append(pad2(a, n_nodes[t], sum_ns_pad[t]))   # zero cols match zeroed scratch rows
    w1cat = [jnp.concatenate([pad2(w1[r], in_pad, hid_pad) for (r, _d) in rel_of_src[s]],
                             axis=1) for s in range(n_nt)]
    w2cat = [jnp.concatenate([pad2(w2[r], hid_pad, out_pad) for (r, _d) in rel_of_src[s]],
                             axis=1) for s in range(n_nt)]
    b1_sum = [pad2(jnp.sum(jnp.stack([b1[r] for (r, _s) in incoming[t]]), axis=0
                           ).reshape(1, hid_feats), 1, hid_pad) for t in range(n_nt)]
    b2_sum = [pad2(jnp.sum(jnp.stack([b2[r] for (r, _s) in incoming[t]]), axis=0
                           ).reshape(1, out_feats), 1, out_pad) for t in range(n_nt)]

    # bf16 MXU operands (accumulation is f32 inside the kernel)
    bf = lambda v: v.astype(jnp.bfloat16)
    x_bf = [bf(v) for v in x_pad]
    a_cat_bf = [bf(v) for v in a_cat]
    w1cat_bf = [bf(v) for v in w1cat]
    w2cat_bf = [bf(v) for v in w2cat]

    meta = dict(n_nodes=n_nodes, ns_pad=ns_pad, incoming=incoming,
                rel_of_src=rel_of_src, col_idx=col_idx, row_off=row_off,
                sum_ns_pad=sum_ns_pad, in_pad=in_pad, hid_pad=hid_pad, out_pad=out_pad)

    outs = hgcn_forward(x_bf, a_cat_bf, w1cat_bf, w2cat_bf, b1_sum, b2_sum, meta)
    outs = jax.tree_util.tree_map(jax.block_until_ready, outs)

    want = reference_forward(x_bf, a_cat_bf, w1cat_bf, w2cat_bf, b1_sum, b2_sum, meta)
    for t in range(n_nt):
        np.testing.assert_allclose(np.asarray(outs[t]), np.asarray(want[t]),
                                   rtol=5e-3, atol=5e-3)
    # real (unpadded) module outputs, if needed downstream: outs[t][:, :out_feats]
    print("KERNEL_OK")
</pallas_src>

<mosaic_0001>
module attributes {stable_mosaic.version = 11 : i64} {
  func.func @kernel(%arg0: memref<40x128xbf16, #tpu.memory_space<vmem>>, %arg1: memref<24x128xbf16, #tpu.memory_space<vmem>>, %arg2: memref<40x128xbf16, #tpu.memory_space<vmem>>, %arg3: memref<24x128xbf16, #tpu.memory_space<vmem>>, %arg4: memref<128x256xbf16, #tpu.memory_space<vmem>>, %arg5: memref<128x128xbf16, #tpu.memory_space<vmem>>, %arg6: memref<128x256xbf16, #tpu.memory_space<vmem>>, %arg7: memref<128x128xbf16, #tpu.memory_space<vmem>>, %arg8: memref<1x128xf32, #tpu.memory_space<vmem>>, %arg9: memref<1x128xf32, #tpu.memory_space<vmem>>, %arg10: memref<1x128xf32, #tpu.memory_space<vmem>>, %arg11: memref<1x128xf32, #tpu.memory_space<vmem>>, %arg12: memref<40x128xf32, #tpu.memory_space<vmem>>, %arg13: memref<24x128xf32, #tpu.memory_space<vmem>>, %arg14: memref<128x128xbf16, #tpu.memory_space<vmem>>, %arg15: memref<128x128xbf16, #tpu.memory_space<vmem>>, %arg16: memref<40x128xbf16, #tpu.memory_space<vmem>>, %arg17: memref<24x128xbf16, #tpu.memory_space<vmem>>) attributes {dimension_semantics = [], scalar_prefetch = 0 : i64, scratch_operands = 4 : i64, tpu.core_type = #tpu.core_type<tc>} {
    %cst = arith.constant 0.000000e+00 : bf16
    %0 = vector.broadcast %cst : bf16 to vector<128x128xbf16>
    %c0 = arith.constant 0 : index
    %c0_0 = arith.constant 0 : index
    %1 = vector.load %arg14[%c0, %c0_0] : memref<128x128xbf16, #tpu.memory_space<vmem>>, vector<128x128xbf16>
    tpu.vector_store %arg14[%c0, %c0_0], %0 {strides = array<i32>} : memref<128x128xbf16, #tpu.memory_space<vmem>>, vector<128x128xbf16>,
    %cst_1 = arith.constant 0.000000e+00 : bf16
    %2 = vector.broadcast %cst_1 : bf16 to vector<128x128xbf16>
    %c0_2 = arith.constant 0 : index
    %c0_3 = arith.constant 0 : index
    %3 = vector.load %arg15[%c0_2, %c0_3] : memref<128x128xbf16, #tpu.memory_space<vmem>>, vector<128x128xbf16>
    tpu.vector_store %arg15[%c0_2, %c0_3], %2 {strides = array<i32>} : memref<128x128xbf16, #tpu.memory_space<vmem>>, vector<128x128xbf16>,
    %c0_4 = arith.constant 0 : index
    %c0_5 = arith.constant 0 : index
    %4 = vector.load %arg0[%c0_4, %c0_5] : memref<40x128xbf16, #tpu.memory_space<vmem>>, vector<40x128xbf16>
    %c0_6 = arith.constant 0 : index
    %c0_7 = arith.constant 0 : index
    %5 = vector.load %arg4[%c0_6, %c0_7] : memref<128x256xbf16, #tpu.memory_space<vmem>>, vector<128x256xbf16>
    %cst_8 = arith.constant dense<0.000000e+00> : vector<40x256xf32>
    %6 = tpu.matmul %4, %5, %cst_8 {dimension_numbers = #tpu.dot_dimension_numbers<[1], [0], [0], [1], [0, 0, 1, 1], [], []>} : vector<40x128xbf16>, vector<128x256xbf16>, vector<40x256xf32> -> vector<40x256xf32>
    %7 = vector.extract_strided_slice %6 {offsets = [0, 0], sizes = [40, 128], strides = [1, 1]} : vector<40x256xf32> to vector<40x128xf32>
    %8 = arith.truncf %7 : vector<40x128xf32> to vector<40x128xbf16>
    %c0_9 = arith.constant 0 : index
    %c0_10 = arith.constant 0 : index
    %9 = vector.load %arg14[%c0_9, %c0_10] : memref<128x128xbf16, #tpu.memory_space<vmem>>, vector<40x128xbf16>
    tpu.vector_store %arg14[%c0_9, %c0_10], %8 {strides = array<i32>} : memref<128x128xbf16, #tpu.memory_space<vmem>>, vector<40x128xbf16>,
    %10 = vector.extract_strided_slice %6 {offsets = [0, 128], sizes = [40, 128], strides = [1, 1]} : vector<40x256xf32> to vector<40x128xf32>
    %11 = arith.truncf %10 : vector<40x128xf32> to vector<40x128xbf16>
    %c0_11 = arith.constant 0 : index
    %c0_12 = arith.constant 0 : index
    %12 = vector.load %arg15[%c0_11, %c0_12] : memref<128x128xbf16, #tpu.memory_space<vmem>>, vector<40x128xbf16>
    tpu.vector_store %arg15[%c0_11, %c0_12], %11 {strides = array<i32>} : memref<128x128xbf16, #tpu.memory_space<vmem>>, vector<40x128xbf16>,
    %c0_13 = arith.constant 0 : index
    %c0_14 = arith.constant 0 : index
    %13 = vector.load %arg1[%c0_13, %c0_14] : memref<24x128xbf16, #tpu.memory_space<vmem>>, vector<24x128xbf16>
    %c0_15 = arith.constant 0 : index
    %c0_16 = arith.constant 0 : index
    %14 = vector.load %arg5[%c0_15, %c0_16] : memref<128x128xbf16, #tpu.memory_space<vmem>>, vector<128x128xbf16>
    %cst_17 = arith.constant dense<0.000000e+00> : vector<24x128xf32>
    %15 = tpu.matmul %13, %14, %cst_17 {dimension_numbers = #tpu.dot_dimension_numbers<[1], [0], [0], [1], [0, 0, 1, 1], [], []>} : vector<24x128xbf16>, vector<128x128xbf16>, vector<24x128xf32> -> vector<24x128xf32>
    %16 = arith.truncf %15 : vector<24x128xf32> to vector<24x128xbf16>
    %c48 = arith.constant 48 : index
    %c0_18 = arith.constant 0 : index
    %17 = vector.load %arg14[%c48, %c0_18] : memref<128x128xbf16, #tpu.memory_space<vmem>>, vector<24x128xbf16>
    tpu.vector_store %arg14[%c48, %c0_18], %16 {strides = array<i32>} : memref<128x128xbf16, #tpu.memory_space<vmem>>, vector<24x128xbf16>,
    %c0_19 = arith.constant 0 : index
    %c0_20 = arith.constant 0 : index
    %18 = vector.load %arg14[%c0_19, %c0_20] : memref<128x128xbf16, #tpu.memory_space<vmem>>, vector<128x128xbf16>
    %c0_21 = arith.constant 0 : index
    %c0_22 = arith.constant 0 : index
    %19 = vector.load %arg2[%c0_21, %c0_22] : memref<40x128xbf16, #tpu.memory_space<vmem>>, vector<40x128xbf16>
    %cst_23 = arith.constant dense<0.000000e+00> : vector<40x128xf32>
    %20 = tpu.matmul %19, %18, %cst_23 {dimension_numbers = #tpu.dot_dimension_numbers<[1], [0], [0], [1], [0, 0, 1, 1], [], []>} : vector<40x128xbf16>, vector<128x128xbf16>, vector<40x128xf32> -> vector<40x128xf32>
    %c0_24 = arith.constant 0 : index
    %c0_25 = arith.constant 0 : index
    %21 = vector.load %arg8[%c0_24, %c0_25] : memref<1x128xf32, #tpu.memory_space<vmem>>, vector<1x128xf32>
    %22 = vector.broadcast %21 : vector<1x128xf32> to vector<40x128xf32>
    %23 = arith.addf %20, %22 : vector<40x128xf32>
    %cst_26 = arith.constant 0.000000e+00 : f32
    %24 = vector.broadcast %cst_26 : f32 to vector<40x128xf32>
    %25 = arith.maximumf %23, %24 : vector<40x128xf32>
    %26 = arith.truncf %25 : vector<40x128xf32> to vector<40x128xbf16>
    %c0_27 = arith.constant 0 : index
    %c0_28 = arith.constant 0 : index
    %27 = vector.load %arg16[%c0_27, %c0_28] : memref<40x128xbf16, #tpu.memory_space<vmem>>, vector<40x128xbf16>
    tpu.vector_store %arg16[%c0_27, %c0_28], %26 {strides = array<i32>} : memref<40x128xbf16, #tpu.memory_space<vmem>>, vector<40x128xbf16>,
    %c0_29 = arith.constant 0 : index
    %c0_30 = arith.constant 0 : index
    %28 = vector.load %arg15[%c0_29, %c0_30] : memref<128x128xbf16, #tpu.memory_space<vmem>>, vector<128x128xbf16>
    %c0_31 = arith.constant 0 : index
    %c0_32 = arith.constant 0 : index
    %29 = vector.load %arg3[%c0_31, %c0_32] : memref<24x128xbf16, #tpu.memory_space<vmem>>, vector<24x128xbf16>
    %cst_33 = arith.constant dense<0.000000e+00> : vector<24x128xf32>
    %30 = tpu.matmul %29, %28, %cst_33 {dimension_numbers = #tpu.dot_dimension_numbers<[1], [0], [0], [1], [0, 0, 1, 1], [], []>} : vector<24x128xbf16>, vector<128x128xbf16>, vector<24x128xf32> -> vector<24x128xf32>
    %c0_34 = arith.constant 0 : index
    %c0_35 = arith.constant 0 : index
    %31 = vector.load %arg9[%c0_34, %c0_35] : memref<1x128xf32, #tpu.memory_space<vmem>>, vector<1x128xf32>
    %32 = vector.broadcast %31 : vector<1x128xf32> to vector<24x128xf32>
    %33 = arith.addf %30, %32 : vector<24x128xf32>
    %cst_36 = arith.constant 0.000000e+00 : f32
    %34 = vector.broadcast %cst_36 : f32 to vector<24x128xf32>
    %35 = arith.maximumf %33, %34 : vector<24x128xf32>
    %36 = arith.truncf %35 : vector<24x128xf32> to vector<24x128xbf16>
    %c0_37 = arith.constant 0 : index
    %c0_38 = arith.constant 0 : index
    %37 = vector.load %arg17[%c0_37, %c0_38] : memref<24x128xbf16, #tpu.memory_space<vmem>>, vector<24x128xbf16>
    tpu.vector_store %arg17[%c0_37, %c0_38], %36 {strides = array<i32>} : memref<24x128xbf16, #tpu.memory_space<vmem>>, vector<24x128xbf16>,
    %c0_39 = arith.constant 0 : index
    %c0_40 = arith.constant 0 : index
    %38 = vector.load %arg16[%c0_39, %c0_40] : memref<40x128xbf16, #tpu.memory_space<vmem>>, vector<40x128xbf16>
    %c0_41 = arith.constant 0 : index
    %c0_42 = arith.constant 0 : index
    %39 = vector.load %arg6[%c0_41, %c0_42] : memref<128x256xbf16, #tpu.memory_space<vmem>>, vector<128x256xbf16>
    %cst_43 = arith.constant dense<0.000000e+00> : vector<40x256xf32>
    %40 = tpu.matmul %38, %39, %cst_43 {dimension_numbers = #tpu.dot_dimension_numbers<[1], [0], [0], [1], [0, 0, 1, 1], [], []>} : vector<40x128xbf16>, vector<128x256xbf16>, vector<40x256xf32> -> vector<40x256xf32>
    %41 = vector.extract_strided_slice %40 {offsets = [0, 0], sizes = [40, 128], strides = [1, 1]} : vector<40x256xf32> to vector<40x128xf32>
    %42 = arith.truncf %41 : vector<40x128xf32> to vector<40x128xbf16>
    %c0_44 = arith.constant 0 : index
    %c0_45 = arith.constant 0 : index
    %43 = vector.load %arg14[%c0_44, %c0_45] : memref<128x128xbf16, #tpu.memory_space<vmem>>, vector<40x128xbf16>
    tpu.vector_store %arg14[%c0_44, %c0_45], %42 {strides = array<i32>} : memref<128x128xbf16, #tpu.memory_space<vmem>>, vector<40x128xbf16>,
    %44 = vector.extract_strided_slice %40 {offsets = [0, 128], sizes = [40, 128], strides = [1, 1]} : vector<40x256xf32> to vector<40x128xf32>
    %45 = arith.truncf %44 : vector<40x128xf32> to vector<40x128xbf16>
    %c0_46 = arith.constant 0 : index
    %c0_47 = arith.constant 0 : index
    %46 = vector.load %arg15[%c0_46, %c0_47] : memref<128x128xbf16, #tpu.memory_space<vmem>>, vector<40x128xbf16>
    tpu.vector_store %arg15[%c0_46, %c0_47], %45 {strides = array<i32>} : memref<128x128xbf16, #tpu.memory_space<vmem>>, vector<40x128xbf16>,
    %c0_48 = arith.constant 0 : index
    %c0_49 = arith.constant 0 : index
    %47 = vector.load %arg17[%c0_48, %c0_49] : memref<24x128xbf16, #tpu.memory_space<vmem>>, vector<24x128xbf16>
    %c0_50 = arith.constant 0 : index
    %c0_51 = arith.constant 0 : index
    %48 = vector.load %arg7[%c0_50, %c0_51] : memref<128x128xbf16, #tpu.memory_space<vmem>>, vector<128x128xbf16>
    %cst_52 = arith.constant dense<0.000000e+00> : vector<24x128xf32>
    %49 = tpu.matmul %47, %48, %cst_52 {dimension_numbers = #tpu.dot_dimension_numbers<[1], [0], [0], [1], [0, 0, 1, 1], [], []>} : vector<24x128xbf16>, vector<128x128xbf16>, vector<24x128xf32> -> vector<24x128xf32>
    %50 = arith.truncf %49 : vector<24x128xf32> to vector<24x128xbf16>
    %c48_53 = arith.constant 48 : index
    %c0_54 = arith.constant 0 : index
    %51 = vector.load %arg14[%c48_53, %c0_54] : memref<128x128xbf16, #tpu.memory_space<vmem>>, vector<24x128xbf16>
    tpu.vector_store %arg14[%c48_53, %c0_54], %50 {strides = array<i32>} : memref<128x128xbf16, #tpu.memory_space<vmem>>, vector<24x128xbf16>,
    %c0_55 = arith.constant 0 : index
    %c0_56 = arith.constant 0 : index
    %52 = vector.load %arg14[%c0_55, %c0_56] : memref<128x128xbf16, #tpu.memory_space<vmem>>, vector<128x128xbf16>
    %c0_57 = arith.constant 0 : index
    %c0_58 = arith.constant 0 : index
    %53 = vector.load %arg2[%c0_57, %c0_58] : memref<40x128xbf16, #tpu.memory_space<vmem>>, vector<40x128xbf16>
    %cst_59 = arith.constant dense<0.000000e+00> : vector<40x128xf32>
    %54 = tpu.matmul %53, %52, %cst_59 {dimension_numbers = #tpu.dot_dimension_numbers<[1], [0], [0], [1], [0, 0, 1, 1], [], []>} : vector<40x128xbf16>, vector<128x128xbf16>, vector<40x128xf32> -> vector<40x128xf32>
    %c0_60 = arith.constant 0 : index
    %c0_61 = arith.constant 0 : index
    %55 = vector.load %arg10[%c0_60, %c0_61] : memref<1x128xf32, #tpu.memory_space<vmem>>, vector<1x128xf32>
    %56 = vector.broadcast %55 : vector<1x128xf32> to vector<40x128xf32>
    %57 = arith.addf %54, %56 : vector<40x128xf32>
    %c0_62 = arith.constant 0 : index
    %c0_63 = arith.constant 0 : index
    %58 = vector.load %arg12[%c0_62, %c0_63] : memref<40x128xf32, #tpu.memory_space<vmem>>, vector<40x128xf32>
    tpu.vector_store %arg12[%c0_62, %c0_63], %57 {strides = array<i32>} : memref<40x128xf32, #tpu.memory_space<vmem>>, vector<40x128xf32>,
    %c0_64 = arith.constant 0 : index
    %c0_65 = arith.constant 0 : index
    %59 = vector.load %arg15[%c0_64, %c0_65] : memref<128x128xbf16, #tpu.memory_space<vmem>>, vector<128x128xbf16>
    %c0_66 = arith.constant 0 : index
    %c0_67 = arith.constant 0 : index
    %60 = vector.load %arg3[%c0_66, %c0_67] : memref<24x128xbf16, #tpu.memory_space<vmem>>, vector<24x128xbf16>
    %cst_68 = arith.constant dense<0.000000e+00> : vector<24x128xf32>
    %61 = tpu.matmul %60, %59, %cst_68 {dimension_numbers = #tpu.dot_dimension_numbers<[1], [0], [0], [1], [0, 0, 1, 1], [], []>} : vector<24x128xbf16>, vector<128x128xbf16>, vector<24x128xf32> -> vector<24x128xf32>
    %c0_69 = arith.constant 0 : index
    %c0_70 = arith.constant 0 : index
    %62 = vector.load %arg11[%c0_69, %c0_70] : memref<1x128xf32, #tpu.memory_space<vmem>>, vector<1x128xf32>
    %63 = vector.broadcast %62 : vector<1x128xf32> to vector<24x128xf32>
    %64 = arith.addf %61, %63 : vector<24x128xf32>
    %c0_71 = arith.constant 0 : index
    %c0_72 = arith.constant 0 : index
    %65 = vector.load %arg13[%c0_71, %c0_72] : memref<24x128xf32, #tpu.memory_space<vmem>>, vector<24x128xf32>
    tpu.vector_store %arg13[%c0_71, %c0_72], %64 {strides = array<i32>} : memref<24x128xf32, #tpu.memory_space<vmem>>, vector<24x128xf32>,
    return
  }
}

</mosaic_0001>

<bundles_post_ra>
// kernel: tpu_custom_call.1
= control target key start
LH: loop header
LB: loop body
LE: loop exit
PB: predicated region body
PF: predicated region fallthrough
CT: control target
= control target key end

     0   :  { %19 = vsyncpa [#allocation7], 0  ;;  %s2598_s0 = inlined_call_operand.hbm [shape: bf16[40,128], index: 0, kind: input, shape index: {}]   ;;  %s2599_s1 = inlined_call_operand.hbm [shape: bf16[24,128], index: 1, kind: input, shape index: {}]   ;;  %s2600_s2 = inlined_call_operand.hbm [shape: bf16[40,128], index: 2, kind: input, shape index: {}]   ;;  %s2601_s3 = inlined_call_operand.hbm [shape: bf16[24,128], index: 3, kind: input, shape index: {}]   ;;  %s2602_s4 = inlined_call_operand.hbm [shape: bf16[128,256], index: 4, kind: input, shape index: {}]   ;;  %s2603_s5 = inlined_call_operand.hbm [shape: bf16[128,128], index: 5, kind: input, shape index: {}]   ;;  %s2604_s6 = inlined_call_operand.hbm [shape: bf16[128,256], index: 6, kind: input, shape index: {}]   ;;  %s2605_s7 = inlined_call_operand.hbm [shape: bf16[128,128], index: 7, kind: input, shape index: {}]   ;;  %s2606_s8 = inlined_call_operand.vmem [shape: f32[1,128], index: 8, kind: input, shape index: {}]   ;;  %s2607_s9 = inlined_call_operand.vmem [shape: f32[1,128], index: 9, kind: input, shape index: {}]   ;;  %s2608_s10 = inlined_call_operand.vmem [shape: f32[1,128], index: 10, kind: input, shape index: {}]   ;;  %s2609_s11 = inlined_call_operand.vmem [shape: f32[1,128], index: 11, kind: input, shape index: {}]   ;;  %s2610_s12 = inlined_call_operand.hbm [shape: f32[40,128], index: 12, kind: output, shape index: {0}]   ;;  %s2611_s13 = inlined_call_operand.hbm [shape: f32[24,128], index: 13, kind: output, shape index: {1}]  }
   0x1   :  { %20 = vsyncpa [#allocation10], 0 }
   0x2   :  { %21 = vsyncpa [#allocation13], 0 }
   0x3   :  { %22 = vsyncpa [#allocation16], 0 }
   0x4   :  { %23 = vsyncpa [#allocation19], 0 }
   0x5   :  { %24 = vsyncpa [#allocation8], 0 }
   0x6   :  { %25 = vsyncpa [#allocation22], 0  ;;  %s2373_s25 = smov [#allocation9]   ;;  %s2374_s27 = smov [#allocation12]  }
   0x7   :  { %s43_s26 = sshll.u32 %s2373_s25, 4  ;;  %s67_s28 = sshll.u32 %s2374_s27, 4  ;;  %s44_s26 = int_to_ptr.vmem [resolvable:$true] %s43_s26  ;;  %s68_s28 = int_to_ptr.vmem [resolvable:$true] %s67_s28 }
   0x8   :  { %s2167_s29 = scalar_lea.vmem %s44_s26, 192  ;;  %p2172_p1 = scmp.lt.s32.totalorder %s44_s26, %s44_s26 }
   0x9   :  { %p2168_p0 = scmp.ne.s32.totalorder %s44_s26, %s2167_s29  ;;  %p2173_p2 = scmp.lt.s32.totalorder %s2167_s29, %s2167_s29 }
   0xb   :  { %p2174_p3 = por %p2173_p2, %p2172_p1 }
   0xd   :  { %p2175_p4 = pnand %p2174_p3, %p2168_p0 }
   0xf   :  { %2178 = shalt.err (!%p2175_p4)
}
  0x10   :  { %s2375_s30 = smov 64   ;;  %s2376_s14 = smov 4  }
  0x11   :  { %49 = dma.hbm_to_vmem [thread:$0]  %s2599_s1, 192, %s44_s26, [#allocation10], %s2375_s30, %s2375_s30, %s2376_s14  }
  0x12   :  { %s2187_s17 = scalar_lea.vmem %s68_s28, 192  ;;  %p2192_p6 = scmp.lt.s32.totalorder %s68_s28, %s68_s28 }
  0x13   :  { %p2188_p5 = scmp.ne.s32.totalorder %s68_s28, %s2187_s17  ;;  %p2193_p7 = scmp.lt.s32.totalorder %s2187_s17, %s2187_s17 }
  0x15   :  { %p2194_p8 = por %p2193_p7, %p2192_p6 }
  0x17   :  { %p2195_p9 = pnand %p2194_p8, %p2188_p5 }
  0x19   :  { %2198 = shalt.err (!%p2195_p9)
}
  0x1a   :  { %73 = dma.hbm_to_vmem [thread:$0]  %s2601_s3, 192, %s68_s28, [#allocation13], %s2375_s30, %s2375_s30, %s2376_s14  }
  0x1b   :  { %s2377_s20 = smov [#allocation15]   ;;  %s2378_s22 = smov [#allocation6]  }
  0x1c   :  { %s91_s21 = sshll.u32 %s2377_s20, 4  ;;  %s31_s23 = sshll.u32 %s2378_s22, 4  ;;  %s92_s21 = int_to_ptr.vmem [resolvable:$true] %s91_s21  ;;  %s32_s23 = int_to_ptr.vmem [resolvable:$true] %s31_s23 }
  0x1d   :  { %s2207_s1 = scalar_lea.vmem %s92_s21, 1024  ;;  %p2212_p11 = scmp.lt.s32.totalorder %s92_s21, %s92_s21 }
  0x1e   :  { %p2208_p10 = scmp.ne.s32.totalorder %s92_s21, %s2207_s1  ;;  %p2213_p12 = scmp.lt.s32.totalorder %s2207_s1, %s2207_s1 }
  0x20   :  { %p2214_p13 = por %p2213_p12, %p2212_p11 }
  0x22   :  { %p2215_p0 = pnand %p2214_p13, %p2208_p10 }
  0x24   :  { %2218 = shalt.err (!%p2215_p0)
}
  0x25   :  { %97 = dma.hbm_to_vmem [thread:$0]  %s2603_s5, 1024, %s92_s21, [#allocation16], %s2375_s30, %s2375_s30, %s2376_s14  }
  0x26   :  { %s2227_s3 = scalar_lea.vmem %s32_s23, 320  ;;  %p2232_p2 = scmp.lt.s32.totalorder %s32_s23, %s32_s23 }
  0x27   :  { %p2228_p1 = scmp.ne.s32.totalorder %s32_s23, %s2227_s3  ;;  %p2233_p3 = scmp.lt.s32.totalorder %s2227_s3, %s2227_s3 }
  0x29   :  { %p2234_p4 = por %p2233_p3, %p2232_p2 }
  0x2b   :  { %p2235_p5 = pnand %p2234_p4, %p2228_p1 }
  0x2d   :  { %2238 = shalt.err (!%p2235_p5)
}
  0x2e   :  { %37 = dma.hbm_to_vmem [thread:$0]  %s2598_s0, 320, %s32_s23, [#allocation7], %s2375_s30, %s2375_s30, %s2376_s14  }
  0x2f   :  { %s2379_s28 = smov [#allocation11]   ;;  %s2380_s15 = smov [#allocation14]  }
  0x30   :  { %s55_s29 = sshll.u32 %s2379_s28, 4  ;;  %s79_s16 = sshll.u32 %s2380_s15, 4  ;;  %s56_s29 = int_to_ptr.vmem [resolvable:$true] %s55_s29  ;;  %s80_s16 = int_to_ptr.vmem [resolvable:$true] %s79_s16 }
  0x31   :  { %s2247_s5 = scalar_lea.vmem %s56_s29, 320  ;;  %p2252_p7 = scmp.lt.s32.totalorder %s56_s29, %s56_s29 }
  0x32   :  { %p2248_p6 = scmp.ne.s32.totalorder %s56_s29, %s2247_s5  ;;  %p2253_p8 = scmp.lt.s32.totalorder %s2247_s5, %s2247_s5 }
  0x34   :  { %p2254_p9 = por %p2253_p8, %p2252_p7 }
  0x36   :  { %p2255_p10 = pnand %p2254_p9, %p2248_p6 }
  0x38   :  { %2258 = shalt.err (!%p2255_p10)
}
  0x39   :  { %61 = dma.hbm_to_vmem [thread:$0]  %s2600_s2, 320, %s56_s29, [#allocation10], %s2375_s30, %s2375_s30, %s2376_s14  }
  0x3a   :  { %s2267_s0 = scalar_lea.vmem %s80_s16, 2048  ;;  %p2272_p12 = scmp.lt.s32.totalorder %s80_s16, %s80_s16 }
  0x3b   :  { %p2268_p11 = scmp.ne.s32.totalorder %s80_s16, %s2267_s0  ;;  %p2273_p13 = scmp.lt.s32.totalorder %s2267_s0, %s2267_s0 }
  0x3d   :  { %p2274_p0 = por %p2273_p13, %p2272_p12 }
  0x3f   :  { %p2275_p1 = pnand %p2274_p0, %p2268_p11 }
  0x41   :  { %2278 = shalt.err (!%p2275_p1)
}
  0x42   :  { %s2381_s19 = smov 128   ;;  %s2382_s20 = smov 8  }
  0x43   :  { %85 = dma.hbm_to_vmem [thread:$0]  %s2602_s4, 2048, %s80_s16, [#allocation13], %s2381_s19, %s2381_s19, %s2382_s20  }
  0x44   :  { %s2383_s23 = smov [#allocation17]   ;;  %s2384_s24 = smov [#allocation18]  }
  0x45   :  { %s103_s1 = sshll.u32 %s2383_s23, 4  ;;  %s115_s2 = sshll.u32 %s2384_s24, 4  ;;  %s104_s1 = int_to_ptr.vmem [resolvable:$true] %s103_s1  ;;  %s116_s2 = int_to_ptr.vmem [resolvable:$true] %s115_s2 }
  0x46   :  { %s2287_s25 = scalar_lea.vmem %s104_s1, 2048  ;;  %p2292_p3 = scmp.lt.s32.totalorder %s104_s1, %s104_s1 }
  0x47   :  { %p2288_p2 = scmp.ne.s32.totalorder %s104_s1, %s2287_s25  ;;  %p2293_p4 = scmp.lt.s32.totalorder %s2287_s25, %s2287_s25 }
  0x49   :  { %p2294_p5 = por %p2293_p4, %p2292_p3 }
  0x4b   :  { %p2295_p6 = pnand %p2294_p5, %p2288_p2 }
  0x4d   :  { %2298 = shalt.err (!%p2295_p6)
}
  0x4e   :  { %109 = dma.hbm_to_vmem [thread:$0]  %s2604_s6, 2048, %s104_s1, [#allocation16], %s2381_s19, %s2381_s19, %s2382_s20  }
  0x4f   :  { %s2307_s4 = scalar_lea.vmem %s116_s2, 1024  ;;  %p2312_p8 = scmp.lt.s32.totalorder %s116_s2, %s116_s2 }
  0x50   :  { %p2308_p7 = scmp.ne.s32.totalorder %s116_s2, %s2307_s4  ;;  %p2313_p9 = scmp.lt.s32.totalorder %s2307_s4, %s2307_s4 }
  0x52   :  { %p2314_p10 = por %p2313_p9, %p2312_p8 }
  0x54   :  { %p2315_p11 = pnand %p2314_p10, %p2308_p7 }
  0x56   :  { %2318 = shalt.err (!%p2315_p11)
}
  0x57   :  { %121 = dma.hbm_to_vmem [thread:$0]  %s2605_s7, 1024, %s116_s2, [#allocation19], %s2375_s30, %s2375_s30, %s2376_s14  }
  0x58   :  { %2359 = dma.done.wait [#allocation7], 320  }
  0x59   :  { %2360 = vsyncadd [#allocation7], 4294966976 }
  0x5a   :  { %2361 = dma.done.wait [#allocation10], 512  }
  0x5b   :  { %2362 = vsyncadd [#allocation10], 4294966784 }
  0x5c   :  { %2363 = dma.done.wait [#allocation13], 2240  }
  0x5d   :  { %2364 = vsyncadd [#allocation13], 4294965056 }
  0x5e   :  { %2365 = dma.done.wait [#allocation16], 3072  }
  0x5f   :  { %2366 = vsyncadd [#allocation16], 4294964224 }
  0x60   :  { %2367 = dma.done.wait [#allocation19], 1024  }
  0x61   :  { %2368 = vsyncadd [#allocation19], 4294966272  ;;  %v2385_v0 = vmov 0   ;;  %v2043_v1 = vld [vmem:[#allocation14 + $0x74] ss:$8 sps:$4 sm:$0xff]   ;;  %v2053_v8 = vld [vmem:[#allocation15 + $0x28] sm:$0xff]  }
  0x62   :  { %336 = vmatprep.mubr.bf16.mxu0 %v2385_v0  ;;  %155 = vst [vmem:[#allocation2] sm:$0xf] %v2385_v0  ;;  %156 = vst [vmem:[#allocation2 + $0x4] sm:$0xf] %v2385_v0  ;;  %v2045_v2 = vld [vmem:[#allocation15 + $0x38] sm:$0xff]   ;;  %304 = vmatprep.subr.bf16.mxu0 %v2043_v1  ;;  %v2049_v5 = vld [vmem:[#allocation15 + $0x30] sm:$0xff]  }
  0x63   :  { %157 = vst [vmem:[#allocation2 + $0x8] sm:$0xf] %v2385_v0  ;;  %158 = vst [vmem:[#allocation2 + $0xc] sm:$0xf] %v2385_v0  ;;  %v2046_v3 = vld [vmem:[#allocation14 + $0x70] ss:$8 sps:$4 sm:$0xff]   ;;  %1890 = vmatprep.subr.bf16.mxu1 %v2045_v2 }
  0x64   :  { %159 = vst [vmem:[#allocation2 + $0x10] sm:$0xf] %v2385_v0  ;;  %160 = vst [vmem:[#allocation2 + $0x14] sm:$0xf] %v2385_v0  ;;  %v2047_v4 = vld [vmem:[#allocation14 + $0x64] ss:$8 sps:$4 sm:$0xff]   ;;  %305 = vmatpush1.bf16.msra.mxu0 %v2046_v3  ;;  %1891 = vmatpush3.bf16.msra.mxu1 %v2045_v2 }
  0x65   :  { %161 = vst [vmem:[#allocation2 + $0x18] sm:$0xf] %v2385_v0  ;;  %162 = vst [vmem:[#allocation2 + $0x1c] sm:$0xf] %v2385_v0  ;;  %v2050_v6 = vld [vmem:[#allocation14 + $0x60] ss:$8 sps:$4 sm:$0xff]   ;;  %306 = vmatprep.subr.bf16.mxu0 %v2047_v4  ;;  %1892 = vmatprep.subr.bf16.mxu1 %v2049_v5 }
  0x66   :  { %163 = vst [vmem:[#allocation2 + $0x20] sm:$0xf] %v2385_v0  ;;  %164 = vst [vmem:[#allocation2 + $0x24] sm:$0xf] %v2385_v0  ;;  %v2051_v7 = vld [vmem:[#allocation14 + $0x54] ss:$8 sps:$4 sm:$0xff]  }
  0x67   :  { %165 = vst [vmem:[#allocation2 + $0x28] sm:$0xf] %v2385_v0  ;;  %166 = vst [vmem:[#allocation2 + $0x2c] sm:$0xf] %v2385_v0  ;;  %v2054_v9 = vld [vmem:[#allocation14 + $0x50] ss:$8 sps:$4 sm:$0xff]  }
  0x68   :  { %167 = vst [vmem:[#allocation2 + $0x30] sm:$0xf] %v2385_v0  ;;  %168 = vst [vmem:[#allocation2 + $0x34] sm:$0xf] %v2385_v0  ;;  %307 = vmatpush1.bf16.msra.mxu0 %v2050_v6  ;;  %1893 = vmatpush3.bf16.msra.mxu1 %v2049_v5  ;;  %v2055_v10 = vld [vmem:[#allocation14 + $0x44] ss:$8 sps:$4 sm:$0xff]  }
  0x69   :  { %169 = vst [vmem:[#allocation2 + $0x38] sm:$0xf] %v2385_v0  ;;  %170 = vst [vmem:[#allocation2 + $0x3c] sm:$0xf] %v2385_v0  ;;  %308 = vmatprep.subr.bf16.mxu0 %v2051_v7  ;;  %1894 = vmatprep.subr.bf16.mxu1 %v2053_v8  ;;  %v2057_v11 = vld [vmem:[#allocation15 + $0x20] sm:$0xff]   ;;  %v2061_v14 = vld [vmem:[#allocation15 + $0x18] sm:$0xff]  }
  0x6a   :  { %171 = vst [vmem:[#allocation3] sm:$0xf] %v2385_v0  ;;  %172 = vst [vmem:[#allocation3 + $0x4] sm:$0xf] %v2385_v0  ;;  %v2058_v12 = vld [vmem:[#allocation14 + $0x40] ss:$8 sps:$4 sm:$0xff]  }
  0x6b   :  { %173 = vst [vmem:[#allocation3 + $0x8] sm:$0xf] %v2385_v0  ;;  %174 = vst [vmem:[#allocation3 + $0xc] sm:$0xf] %v2385_v0  ;;  %v2059_v13 = vld [vmem:[#allocation14 + $0x34] ss:$8 sps:$4 sm:$0xff]  }
  0x6c   :  { %175 = vst [vmem:[#allocation3 + $0x10] sm:$0xf] %v2385_v0  ;;  %176 = vst [vmem:[#allocation3 + $0x14] sm:$0xf] %v2385_v0  ;;  %309 = vmatpush1.bf16.msra.mxu0 %v2054_v9  ;;  %1895 = vmatpush3.bf16.msra.mxu1 %v2053_v8  ;;  %v2062_v15 = vld [vmem:[#allocation14 + $0x30] ss:$8 sps:$4 sm:$0xff]  }
  0x6d   :  { %177 = vst [vmem:[#allocation3 + $0x18] sm:$0xf] %v2385_v0  ;;  %178 = vst [vmem:[#allocation3 + $0x1c] sm:$0xf] %v2385_v0  ;;  %310 = vmatprep.subr.bf16.mxu0 %v2055_v10  ;;  %1896 = vmatprep.subr.bf16.mxu1 %v2057_v11  ;;  %v2063_v16 = vld [vmem:[#allocation14 + $0x24] ss:$8 sps:$4 sm:$0xff]  }
  0x6e   :  { %179 = vst [vmem:[#allocation3 + $0x20] sm:$0xf] %v2385_v0  ;;  %180 = vst [vmem:[#allocation3 + $0x24] sm:$0xf] %v2385_v0  ;;  %v2065_v17 = vld [vmem:[#allocation15 + $0x10] sm:$0xff]   ;;  %v2069_v21 = vld [vmem:[#allocation15 + $0x8] sm:$0xff]  }
  0x6f   :  { %181 = vst [vmem:[#allocation3 + $0x28] sm:$0xf] %v2385_v0  ;;  %182 = vst [vmem:[#allocation3 + $0x2c] sm:$0xf] %v2385_v0  ;;  %v2066_v18 = vld [vmem:[#allocation14 + $0x20] ss:$8 sps:$4 sm:$0xff]  }
  0x70   :  { %183 = vst [vmem:[#allocation3 + $0x30] sm:$0xf] %v2385_v0  ;;  %184 = vst [vmem:[#allocation3 + $0x34] sm:$0xf] %v2385_v0  ;;  %311 = vmatpush1.bf16.msra.mxu0 %v2058_v12  ;;  %1897 = vmatpush3.bf16.msra.mxu1 %v2057_v11  ;;  %v2075_v19 = vld [vmem:[#allocation9] sm:$0xff]   ;;  %v2073_v24 = vld [vmem:[#allocation15] sm:$0xff]  }
  0x71   :  { %185 = vst [vmem:[#allocation3 + $0x38] sm:$0xf] %v2385_v0  ;;  %186 = vst [vmem:[#allocation3 + $0x3c] sm:$0xf] %v2385_v0  ;;  %312 = vmatprep.subr.bf16.mxu0 %v2059_v13  ;;  %1898 = vmatprep.subr.bf16.mxu1 %v2061_v14  ;;  %v2067_v20 = vld [vmem:[#allocation14 + $0x14] ss:$8 sps:$4 sm:$0xff]  }
  0x72   :  { %v2070_v22 = vld [vmem:[#allocation14 + $0x10] ss:$8 sps:$4 sm:$0xff]   ;;  %1906 = vmatprep.mubr.bf16.mxu1 %v2075_v19  ;;  %v2071_v23 = vld [vmem:[#allocation14 + $0x4] ss:$8 sps:$4 sm:$0xff]   ;;  %v2074_v25 = vld [vmem:[#allocation14] ss:$8 sps:$4 sm:$0xff]  }
  0x73   :  { %v2076_v26 = vld [vmem:[#allocation6] sm:$0xff]   ;;  %v2077_v27 = vld [vmem:[#allocation9 + $0x8] ss:$0 sps:$4 sm:$0xff]   ;;  %v2078_v28 = vld [vmem:[#allocation6 + $0x8] sm:$0xff]   ;;  %v2386_v31 = vmov 0.0   ;;  %vm2387_vm0 = vmmov 0  }
  0x74   :  { %313 = vmatpush1.bf16.msra.mxu0 %v2062_v15  ;;  %1899 = vmatpush3.bf16.msra.mxu1 %v2061_v14  ;;  %v2079_v29 = vld [vmem:[#allocation6 + $0x10] ss:$0 sps:$4 sm:$0xff]   ;;  %v2080_v30 = vld [vmem:[#allocation2 + $0x38] sm:$0xff]   ;;  %v2082_v33 = vld [vmem:[#allocation2 + $0x28] sm:$0xff]   ;;  %s2388_s16 = smov [#allocation21]  }
  0x75   :  { %314 = vmatprep.subr.bf16.mxu0 %v2063_v16  ;;  %1900 = vmatprep.subr.bf16.mxu1 %v2065_v17  ;;  %v2081_v32 = vld [vmem:[#allocation2 + $0x30] sm:$0xff]   ;;  %v2088_v37 = vld [vmem:[#allocation3 + $0x20] sm:$0xff]   ;;  %v2089_v38 = vld [vmem:[#allocation3 + $0x18] sm:$0xff]  }
  0x76   :  { %v2087_v36 = vld [vmem:[#allocation3 + $0x28] sm:$0xff]   ;;  %v2097_v39 = vld [vmem:[#allocation12] sm:$0xff]   ;;  %v2096_v10 = vld [vmem:[#allocation11] sm:$0xff]  }
  0x77   :  { %v2085_v35 = vld [vmem:[#allocation3 + $0x30] sm:$0xff]   ;;  %v2106_v12 = vld [vmem:[#allocation17 + $0x64] ss:$8 sps:$4 sm:$0xff]   ;;  %v2107_v13 = vld [vmem:[#allocation18 + $0x38] sm:$0xff]  }
  0x78   :  { %315 = vmatpush1.bf16.msra.mxu0 %v2066_v18  ;;  %1901 = vmatpush3.bf16.msra.mxu1 %v2065_v17  ;;  %v2083_v34 = vld [vmem:[#allocation3 + $0x38] sm:$0xff]   ;;  %v2104_v15 = vld [vmem:[#allocation17 + $0x60] ss:$8 sps:$4 sm:$0xff]   ;;  %v2111_v16 = vld [vmem:[#allocation18 + $0x30] sm:$0xff]  }
  0x79   :  { %316 = vmatprep.subr.bf16.mxu0 %v2067_v20  ;;  %1902 = vmatprep.subr.bf16.mxu1 %v2069_v21  ;;  %v2103_v7 = vld [vmem:[#allocation17 + $0x74] ss:$8 sps:$4 sm:$0xff]   ;;  %v2101_v11 = vld [vmem:[#allocation17 + $0x70] ss:$8 sps:$4 sm:$0xff]   ;;  %v2099_v18 = vld [vmem:[#allocation11 + $0x8] sm:$0xff]  }
  0x7a   :  { %v2098_v14 = vld [vmem:[#allocation12 + $0x8] ss:$0 sps:$4 sm:$0xff]   ;;  %v2108_v19 = vld [vmem:[#allocation17 + $0x50] ss:$8 sps:$4 sm:$0xff]  }
  0x7b   :  { %v2110_v17 = vld [vmem:[#allocation17 + $0x54] ss:$8 sps:$4 sm:$0xff]   ;;  %v2100_v20 = vld [vmem:[#allocation11 + $0x10] ss:$0 sps:$4 sm:$0xff]  }
  0x7c   :  { %317 = vmatpush1.bf16.msra.mxu0 %v2070_v22  ;;  %1903 = vmatpush3.bf16.msra.mxu1 %v2069_v21  ;;  %v2114_v21 = vld [vmem:[#allocation17 + $0x44] ss:$8 sps:$4 sm:$0xff]   ;;  %v2112_v22 = vld [vmem:[#allocation17 + $0x40] ss:$8 sps:$4 sm:$0xff]  }
  0x7d   :  { %318 = vmatprep.subr.bf16.mxu0 %v2071_v23  ;;  %1904 = vmatprep.subr.bf16.mxu1 %v2073_v24  ;;  %v2115_v23 = vld [vmem:[#allocation18 + $0x28] sm:$0xff]  }
  0x80   :  { %319 = vmatpush1.bf16.msra.mxu0 %v2074_v25  ;;  %1905 = vmatpush3.bf16.msra.mxu1 %v2073_v24  ;;  %v2118_v24 = vld [vmem:[#allocation17 + $0x34] ss:$8 sps:$4 sm:$0xff]   ;;  %v2116_v25 = vld [vmem:[#allocation17 + $0x30] ss:$8 sps:$4 sm:$0xff]  }
  0x81   :  { %1910 = vmatprep.subr.bf16.mxu0 %v2386_v31  ;;  %1938 = vmatprep.subr.bf16.mxu1 %v2083_v34 }
  0x83   :  { %337 = vmatmul.mubr.bf16.vlgmr.msra.gmra.mxu0 %v2076_v26  ;;  %1907 = vmatmul.mubr.bf16.vlgmr.msra.gmra.mxu1 %v2077_v27  ;;  %v2119_v26 = vld [vmem:[#allocation18 + $0x20] sm:$0xff]  }
  0x84   :  { %346 = vmatprep.mubr.bf16.mxu0 %v2385_v0  ;;  %1911 = vmatpush3.bf16.msra.mxu0 %v2080_v30  ;;  %v2122_v27 = vld [vmem:[#allocation17 + $0x24] ss:$8 sps:$4 sm:$0xff]   ;;  %v2126_v30 = vld [vmem:[#allocation17 + $0x14] ss:$8 sps:$4 sm:$0xff]  }
  0x85   :  { %1912 = vmatprep.subr.bf16.mxu0 %v2386_v31  ;;  %1939 = vmatpush3.bf16.msra.mxu1 %v2083_v34  ;;  %v2130_v34 = vld [vmem:[#allocation17 + $0x4] ss:$8 sps:$4 sm:$0xff]  }
  0x86   :  { %1940 = vmatprep.subr.bf16.mxu1 %v2085_v35  ;;  %1954 = vmatprep.mubr.bf16.mxu1 %v2097_v39 }
  0x88   :  { %1913 = vmatpush3.bf16.msra.mxu0 %v2081_v32  ;;  %v2124_v32 = vld [vmem:[#allocation17 + $0x10] ss:$8 sps:$4 sm:$0xff]  }
  0x89   :  { %1914 = vmatprep.subr.bf16.mxu0 %v2386_v31  ;;  %1941 = vmatpush3.bf16.msra.mxu1 %v2085_v35  ;;  %v2128_v35 = vld [vmem:[#allocation17] ss:$8 sps:$4 sm:$0xff]  }
  0x8a   :  { %1942 = vmatprep.subr.bf16.mxu1 %v2087_v36 }
  0x8b   :  { %347 = vmatmul.mubr.bf16.gmra.mxu0 %v2078_v28  ;;  %v2120_v28 = vld [vmem:[#allocation17 + $0x20] ss:$8 sps:$4 sm:$0xff]  }
  0x8c   :  { %356 = vmatprep.mubr.bf16.mxu0 %v2385_v0  ;;  %1915 = vmatpush3.bf16.msra.mxu0 %v2082_v33  ;;  %v2127_v33 = vld [vmem:[#allocation18 + $0x10] sm:$0xff]  }
  0x8d   :  { %1916 = vmatprep.subr.bf16.mxu0 %v2386_v31  ;;  %1943 = vmatpush3.bf16.msra.mxu1 %v2087_v36  ;;  %v2131_v36 = vld [vmem:[#allocation18 + $0x8] sm:$0xff]  }
  0x8e   :  { %1944 = vmatprep.subr.bf16.mxu1 %v2088_v37 }
  0x91   :  { %1945 = vmatpush3.bf16.msra.mxu1 %v2088_v37  ;;  %v2133_v37 = vld [vmem:[#allocation18] sm:$0xff]  }
  0x92   :  { %1946 = vmatprep.subr.bf16.mxu1 %v2089_v38 }
  0x93   :  { %357 = vmatmul.mubr.bf16.gmra.mxu0 %v2079_v29  ;;  %v2123_v29 = vld [vmem:[#allocation18 + $0x18] sm:$0xff]  }
  0x94   :  { %1926 = vmatprep.mubr.msk.bf16.mxu0 %vm2387_vm0, %v2386_v31 }
  0x95   :  { %1947 = vmatpush3.bf16.msra.mxu1 %v2089_v38  ;;  %v1626_v38 = vld [vmem:[%s2606_s8] ss:$0 sm:$0xff] }
 0x143   :  { %v338_v40 = vpop.f32.mrf.mxu0  ;;  %v1908_v41 = vpop.f32.mrf.mxu1 }
 0x144   :  { %v1734_v42 = vpack.c.bf16 %v1908_v41, %v1908_v41 }
 0x145   :  { %v340_v43 = vpop.f32.mrf.mxu0  ;;  %v528_v44 = vpop.f32.mrf.mxu1 }
 0x146   :  { %557 = vst [vmem:[#allocation2 + $0x20] sm:$0xf] %v1734_v42 }
 0x147   :  { %v342_v45 = vpop.f32.mrf.mxu0  ;;  %v1909_v46 = vpop.f32.mrf.mxu1 }
 0x148   :  { %v1759_v47 = vpack.c.bf16 %v342_v45, %v338_v40  ;;  %v1643_v40 = vld [vmem:[%s2607_s9] ss:$0 sm:$0xff] }
 0x149   :  { %v344_v48 = vpop.f32.mrf.mxu0  ;;  %v531_v49 = vpop.f32.mrf.mxu1 }
 0x14a   :  { %1760 = vst [vmem:[#allocation2] sm:$0xff] %v1759_v47   ;;  %v1769_v50 = vpack.c.bf16 %v344_v48, %v340_v43  ;;  %v1779_v51 = vpack.c.bf16 %v531_v49, %v528_v44 }
 0x14b   :  { %v348_v52 = vpop.f32.mrf.mxu0 }
 0x14c   :  { %1770 = vst [vmem:[#allocation3] sm:$0xff] %v1769_v50   ;;  %1823 = vst [vmem:[#allocation2 + $0x18] sm:$0xff] %v1779_v51  }
 0x14d   :  { %v350_v53 = vpop.f32.mrf.mxu0  ;;  %v2084_v54 = vld [vmem:[#allocation2 + $0x20] sm:$0xff]  }
 0x14e   :  { %1917 = vmatpush3.bf16.msra.mxu0 %v2084_v54 }
 0x14f   :  { %v352_v55 = vpop.f32.mrf.mxu0  ;;  %1918 = vmatprep.subr.bf16.mxu0 %v2386_v31 }
 0x150   :  { %v1764_v56 = vpack.c.bf16 %v352_v55, %v348_v52 }
 0x151   :  { %v354_v57 = vpop.f32.mrf.mxu0  ;;  %v2094_v8 = vld [vmem:[#allocation2] sm:$0xff]  }
 0x152   :  { %1821 = vst [vmem:[#allocation2 + $0x8] sm:$0xff] %v1764_v56   ;;  %v1774_v58 = vpack.c.bf16 %v354_v57, %v350_v53 }
 0x153   :  { %v358_v59 = vpop.f32.mrf.mxu0  ;;  %v2086_v60 = vld [vmem:[#allocation2 + $0x18] sm:$0xff]   ;;  %v2095_v9 = vld [vmem:[#allocation3] sm:$0xff]  }
 0x154   :  { %1822 = vst [vmem:[#allocation3 + $0x8] sm:$0xff] %v1774_v58   ;;  %v1726_v61 = vpack.c.bf16 %v358_v59, %v358_v59  ;;  %1919 = vmatpush3.bf16.msra.mxu0 %v2086_v60 }
 0x155   :  { %v360_v62 = vpop.f32.mrf.mxu0  ;;  %1920 = vmatprep.subr.bf16.mxu0 %v2386_v31 }
 0x156   :  { %390 = vst [vmem:[#allocation2 + $0x10] sm:$0xf] %v1726_v61  ;;  %v1731_v63 = vpack.c.bf16 %v360_v62, %v360_v62 }
 0x157   :  { %v362_v1 = vpop.f32.mrf.mxu0 }
 0x158   :  { %416 = vst [vmem:[#allocation3 + $0x10] sm:$0xf] %v1731_v63 }
 0x159   :  { %v363_v2 = vpop.f32.mrf.mxu0  ;;  %v2092_v5 = vld [vmem:[#allocation2 + $0x8] sm:$0xff]  }
 0x15b   :  { %v2093_v6 = vld [vmem:[#allocation3 + $0x8] sm:$0xff]  }
 0x15d   :  { %v2090_v3 = vld [vmem:[#allocation2 + $0x10] sm:$0xff]  }
 0x15e   :  { %1921 = vmatpush3.bf16.msra.mxu0 %v2090_v3 }
 0x15f   :  { %v2091_v4 = vld [vmem:[#allocation3 + $0x10] sm:$0xff]   ;;  %1922 = vmatprep.subr.bf16.mxu0 %v2386_v31 }
 0x160   :  { %1948 = vmatprep.subr.bf16.mxu1 %v2091_v4 }
 0x161   :  { %1949 = vmatpush3.bf16.msra.mxu1 %v2091_v4 }
 0x162   :  { %1923 = vmatpush3.bf16.msra.mxu0 %v2092_v5  ;;  %1950 = vmatprep.subr.bf16.mxu1 %v2093_v6 }
 0x163   :  { %1924 = vmatprep.subr.bf16.mxu0 %v2386_v31 }
 0x165   :  { %1951 = vmatpush3.bf16.msra.mxu1 %v2093_v6 }
 0x166   :  { %1925 = vmatpush3.bf16.msra.mxu0 %v2094_v8  ;;  %1952 = vmatprep.subr.bf16.mxu1 %v2095_v9 }
 0x167   :  { %1005 = vmatprep.subr.bf16.mxu0 %v2103_v7 }
 0x169   :  { %1927 = vmatmul.mubr.bf16.vlgmr.msra.gmra.mxu0 %v2096_v10  ;;  %1953 = vmatpush3.bf16.msra.mxu1 %v2095_v9 }
 0x16a   :  { %1930 = vmatprep.mubr.msk.bf16.mxu0 %vm2387_vm0, %v2386_v31  ;;  %1006 = vmatpush1.bf16.msra.mxu0 %v2101_v11 }
 0x16b   :  { %1007 = vmatprep.subr.bf16.mxu0 %v2106_v12  ;;  %1958 = vmatprep.subr.bf16.mxu1 %v2107_v13 }
 0x16c   :  { %1955 = vmatmul.mubr.bf16.vlgmr.msra.gmra.mxu1 %v2098_v14 }
 0x16d   :  { %1959 = vmatpush3.bf16.msra.mxu1 %v2107_v13 }
 0x16e   :  { %1008 = vmatpush1.bf16.msra.mxu0 %v2104_v15  ;;  %1960 = vmatprep.subr.bf16.mxu1 %v2111_v16 }
 0x16f   :  { %1009 = vmatprep.subr.bf16.mxu0 %v2110_v17 }
 0x171   :  { %1931 = vmatmul.mubr.bf16.gmra.mxu0 %v2099_v18  ;;  %1961 = vmatpush3.bf16.msra.mxu1 %v2111_v16 }
 0x172   :  { %1934 = vmatprep.mubr.msk.bf16.mxu0 %vm2387_vm0, %v2386_v31  ;;  %1010 = vmatpush1.bf16.msra.mxu0 %v2108_v19  ;;  %v2138_v19 = vld [vmem:[#allocation2 + $0x38] sm:$0xff]  }
 0x173   :  { %1011 = vmatprep.subr.bf16.mxu0 %v2114_v21  ;;  %1962 = vmatprep.subr.bf16.mxu1 %v2115_v23  ;;  %v2140_v21 = vld [vmem:[#allocation3 + $0x38] sm:$0xff]  }
 0x175   :  { %1963 = vmatpush3.bf16.msra.mxu1 %v2115_v23  ;;  %v2142_v23 = vld [vmem:[#allocation3 + $0x30] sm:$0xff]  }
 0x176   :  { %1012 = vmatpush1.bf16.msra.mxu0 %v2112_v22  ;;  %1964 = vmatprep.subr.bf16.mxu1 %v2119_v26  ;;  %v2141_v22 = vld [vmem:[#allocation2 + $0x28] sm:$0xff]  }
 0x177   :  { %1013 = vmatprep.subr.bf16.mxu0 %v2118_v24  ;;  %v2145_v24 = vld [vmem:[#allocation3 + $0x20] sm:$0xff]  }
 0x179   :  { %1935 = vmatmul.mubr.bf16.gmra.mxu0 %v2100_v20  ;;  %1965 = vmatpush3.bf16.msra.mxu1 %v2119_v26  ;;  %v2139_v20 = vld [vmem:[#allocation2 + $0x30] sm:$0xff]  }
 0x17a   :  { %1037 = vmatprep.mubr.bf16.mxu0 %v2385_v0  ;;  %1014 = vmatpush1.bf16.msra.mxu0 %v2116_v25  ;;  %v2147_v25 = vld [vmem:[#allocation3 + $0x18] sm:$0xff]  }
 0x17b   :  { %1015 = vmatprep.subr.bf16.mxu0 %v2122_v27  ;;  %1966 = vmatprep.subr.bf16.mxu1 %v2123_v29  ;;  %v2155_v26 = vld [vmem:[#allocation12] sm:$0xff]  }
 0x17d   :  { %1967 = vmatpush3.bf16.msra.mxu1 %v2123_v29 }
 0x17e   :  { %1016 = vmatpush1.bf16.msra.mxu0 %v2120_v28  ;;  %1968 = vmatprep.subr.bf16.mxu1 %v2127_v33 }
 0x17f   :  { %1017 = vmatprep.subr.bf16.mxu0 %v2126_v30 }
 0x181   :  { %1969 = vmatpush3.bf16.msra.mxu1 %v2127_v33 }
 0x182   :  { %1018 = vmatpush1.bf16.msra.mxu0 %v2124_v32  ;;  %1970 = vmatprep.subr.bf16.mxu1 %v2131_v36 }
 0x183   :  { %1019 = vmatprep.subr.bf16.mxu0 %v2130_v34 }
 0x185   :  { %1971 = vmatpush3.bf16.msra.mxu1 %v2131_v36 }
 0x186   :  { %1020 = vmatpush1.bf16.msra.mxu0 %v2128_v35  ;;  %1972 = vmatprep.subr.bf16.mxu1 %v2133_v37 }
 0x187   :  { %1978 = vmatprep.subr.bf16.mxu0 %v2386_v31 }
 0x189   :  { %1973 = vmatpush3.bf16.msra.mxu1 %v2133_v37 }
 0x18a   :  { %2006 = vmatprep.subr.bf16.mxu1 %v2140_v21 }
 0x229   :  { %v684_v39 = vpop.f32.mrf.mxu0 }
 0x22a   :  { %v685_v42 = vadd.f32 %v1626_v38, %v684_v39 }
 0x22b   :  { %v1928_v41 = vpop.f32.mrf.mxu0 }
 0x22c   :  { %v1956_v43 = vpop.f32.mrf.mxu1  ;;  %v706_v50 = vmax.f32 %v685_v42, 0.0 }
 0x22d   :  { %v864_v44 = vadd.f32 %v1956_v43, %v1643_v40  ;;  %v687_v45 = vpop.f32.mrf.mxu0 }
 0x22e   :  { %v688_v46 = vadd.f32 %v1626_v38, %v687_v45  ;;  %v855_v47 = vpop.f32.mrf.mxu1 }
 0x22f   :  { %v871_v48 = vmax.f32 %v864_v44, 0.0  ;;  %v1929_v49 = vpop.f32.mrf.mxu0  ;;  %v856_v54 = vadd.f32 %v1643_v40, %v855_v47 }
 0x230   :  { %v707_v51 = vmax.f32 %v688_v46, 0.0  ;;  %v1957_v52 = vpop.f32.mrf.mxu1 }
 0x231   :  { %v1742_v53 = vpack.c.bf16 %v871_v48, %v871_v48  ;;  %v692_v55 = vpop.f32.mrf.mxu0  ;;  %v869_v61 = vmax.f32 %v856_v54, 0.0 }
 0x232   :  { %v1784_v56 = vpack.c.bf16 %v707_v51, %v706_v50  ;;  %v858_v57 = vpop.f32.mrf.mxu1  ;;  %v693_v60 = vadd.f32 %v1626_v38, %v692_v55 }
 0x233   :  { %887 = vst [vmem:[#allocation5 + $0x8] sm:$0xf] %v1742_v53  ;;  %v859_v58 = vadd.f32 %v1643_v40, %v858_v57  ;;  %v1932_v59 = vpop.f32.mrf.mxu0 }
 0x234   :  { %1785 = vst [vmem:[#allocation4] sm:$0xff] %v1784_v56   ;;  %v708_v4 = vmax.f32 %v693_v60, 0.0  ;;  %v2154_v60 = vld [vmem:[#allocation11] sm:$0xff]  }
 0x235   :  { %v870_v62 = vmax.f32 %v859_v58, 0.0  ;;  %v695_v63 = vpop.f32.mrf.mxu0 }
 0x236   :  { %v696_v1 = vadd.f32 %v1626_v38, %v695_v63  ;;  %v2158_v63 = vld [vmem:[#allocation11 + $0x10] ss:$0 sps:$4 sm:$0xff]  }
 0x237   :  { %v1794_v2 = vpack.c.bf16 %v870_v62, %v869_v61  ;;  %v1933_v3 = vpop.f32.mrf.mxu0  ;;  %v2156_v61 = vld [vmem:[#allocation12 + $0x8] ss:$0 sps:$4 sm:$0xff]   ;;  %v2157_v62 = vld [vmem:[#allocation11 + $0x8] sm:$0xff]  }
 0x238   :  { %v709_v5 = vmax.f32 %v696_v1, 0.0  ;;  %v1699_v1 = vld [vmem:[%s2608_s10] ss:$0 sm:$0xff]  ;;  %s1564_s10 = sshll.u32 %s2388_s16, 4  ;;  %s1565_s10 = int_to_ptr.vmem [resolvable:$true] %s1564_s10 }
 0x239   :  { %1795 = vst [vmem:[#allocation5] sm:$0xff] %v1794_v2   ;;  %v700_v6 = vpop.f32.mrf.mxu0  ;;  %p2324_p13 = scmp.lt.s32.totalorder %s1565_s10, %s1565_s10 }
 0x23a   :  { %v1789_v7 = vpack.c.bf16 %v709_v5, %v708_v4  ;;  %v701_v8 = vadd.f32 %v1626_v38, %v700_v6  ;;  %v2135_v16 = vld [vmem:[#allocation5 + $0x8] ss:$0 sps:$4 sm:$0xff]   ;;  %v1711_v4 = vld [vmem:[%s2609_s11] ss:$0 sm:$0xff]  ;;  %s2319_s11 = scalar_lea.vmem %s1565_s10, 384 }
 0x23b   :  { %v1936_v9 = vpop.f32.mrf.mxu0  ;;  %v2132_v10 = vld [vmem:[#allocation4] sm:$0xff]   ;;  %p2320_p12 = scmp.ne.s32.totalorder %s1565_s10, %s2319_s11  ;;  %p2325_p0 = scmp.lt.s32.totalorder %s2319_s11, %s2319_s11 }
 0x23c   :  { %1824 = vst [vmem:[#allocation4 + $0x8] sm:$0xff] %v1789_v7   ;;  %v710_v11 = vmax.f32 %v701_v8, 0.0  ;;  %1038 = vmatmul.mubr.bf16.vlgmr.msra.gmra.mxu0 %v2132_v10 }
 0x23d   :  { %v703_v12 = vpop.f32.mrf.mxu0  ;;  %1047 = vmatprep.mubr.bf16.mxu0 %v2385_v0  ;;  %1979 = vmatpush3.bf16.msra.mxu0 %v2138_v19  ;;  %p2326_p1 = por %p2325_p0, %p2324_p13 }
 0x23e   :  { %v1739_v13 = vpack.c.bf16 %v710_v11, %v710_v11  ;;  %1980 = vmatprep.subr.bf16.mxu0 %v2386_v31 }
 0x23f   :  { %v1937_v14 = vpop.f32.mrf.mxu0  ;;  %p2327_p2 = pnand %p2326_p1, %p2320_p12 }
 0x240   :  { %736 = vst [vmem:[#allocation4 + $0x10] sm:$0xf] %v1739_v13  ;;  %v2134_v15 = vld [vmem:[#allocation5] sm:$0xff]  }
 0x241   :  { %1974 = vmatprep.mubr.bf16.mxu1 %v2134_v15  ;;  %1981 = vmatpush3.bf16.msra.mxu0 %v2139_v20 }
 0x242   :  { %1975 = vmatmul.mubr.bf16.vlgmr.msra.gmra.mxu1 %v2135_v16  ;;  %1982 = vmatprep.subr.bf16.mxu0 %v2386_v31 }
 0x243   :  { %v2136_v17 = vld [vmem:[#allocation4 + $0x8] sm:$0xff]   ;;  %2007 = vmatpush3.bf16.msra.mxu1 %v2140_v21  ;;  %2022 = vmatprep.mubr.bf16.mxu1 %v2155_v26 }
 0x244   :  { %1048 = vmatmul.mubr.bf16.gmra.mxu0 %v2136_v17  ;;  %2008 = vmatprep.subr.bf16.mxu1 %v2142_v23 }
 0x245   :  { %1057 = vmatprep.mubr.bf16.mxu0 %v2385_v0  ;;  %1983 = vmatpush3.bf16.msra.mxu0 %v2141_v22  ;;  %v2144_v0 = vld [vmem:[#allocation3 + $0x28] sm:$0xff]  }
 0x246   :  { %1984 = vmatprep.subr.bf16.mxu0 %v2386_v31 }
 0x247   :  { %v2137_v18 = vld [vmem:[#allocation4 + $0x10] ss:$0 sps:$4 sm:$0xff]   ;;  %2009 = vmatpush3.bf16.msra.mxu1 %v2142_v23 }
 0x248   :  { %2010 = vmatprep.subr.bf16.mxu1 %v2144_v0 }
 0x24b   :  { %2011 = vmatpush3.bf16.msra.mxu1 %v2144_v0 }
 0x24c   :  { %1058 = vmatmul.mubr.bf16.gmra.mxu0 %v2137_v18  ;;  %2012 = vmatprep.subr.bf16.mxu1 %v2145_v24 }
 0x24d   :  { %1994 = vmatprep.mubr.msk.bf16.mxu0 %vm2387_vm0, %v2386_v31 }
 0x24f   :  { %2013 = vmatpush3.bf16.msra.mxu1 %v2145_v24 }
 0x250   :  { %2014 = vmatprep.subr.bf16.mxu1 %v2147_v25 }
 0x253   :  { %2015 = vmatpush3.bf16.msra.mxu1 %v2147_v25 }
 0x2fc   :  { %v1039_v27 = vpop.f32.mrf.mxu0 }
 0x2fe   :  { %v1041_v28 = vpop.f32.mrf.mxu0 }
 0x300   :  { %v1043_v29 = vpop.f32.mrf.mxu0 }
 0x301   :  { %v1799_v30 = vpack.c.bf16 %v1043_v29, %v1039_v27 }
 0x302   :  { %v1045_v32 = vpop.f32.mrf.mxu0  ;;  %v1976_v33 = vpop.f32.mrf.mxu1 }
 0x303   :  { %1800 = vst [vmem:[#allocation2] sm:$0xff] %v1799_v30   ;;  %v1809_v34 = vpack.c.bf16 %v1045_v32, %v1041_v28  ;;  %v1755_v35 = vpack.c.bf16 %v1976_v33, %v1976_v33 }
 0x304   :  { %v1049_v36 = vpop.f32.mrf.mxu0  ;;  %v1229_v37 = vpop.f32.mrf.mxu1 }
 0x305   :  { %1810 = vst [vmem:[#allocation3] sm:$0xff] %v1809_v34   ;;  %1258 = vst [vmem:[#allocation2 + $0x20] sm:$0xf] %v1755_v35 }
 0x306   :  { %v1051_v38 = vpop.f32.mrf.mxu0  ;;  %v1977_v39 = vpop.f32.mrf.mxu1 }
 0x308   :  { %v1053_v40 = vpop.f32.mrf.mxu0  ;;  %v1232_v41 = vpop.f32.mrf.mxu1 }
 0x309   :  { %v1804_v42 = vpack.c.bf16 %v1053_v40, %v1049_v36  ;;  %v1819_v43 = vpack.c.bf16 %v1232_v41, %v1229_v37 }
 0x30a   :  { %v1055_v44 = vpop.f32.mrf.mxu0  ;;  %v2152_v58 = vld [vmem:[#allocation2] sm:$0xff]  }
 0x30b   :  { %1825 = vst [vmem:[#allocation2 + $0x8] sm:$0xff] %v1804_v42   ;;  %1827 = vst [vmem:[#allocation2 + $0x18] sm:$0xff] %v1819_v43   ;;  %v1814_v45 = vpack.c.bf16 %v1055_v44, %v1051_v38 }
 0x30c   :  { %v1059_v46 = vpop.f32.mrf.mxu0  ;;  %v2143_v47 = vld [vmem:[#allocation2 + $0x20] sm:$0xff]  }
 0x30d   :  { %1826 = vst [vmem:[#allocation3 + $0x8] sm:$0xff] %v1814_v45   ;;  %v1747_v48 = vpack.c.bf16 %v1059_v46, %v1059_v46  ;;  %1985 = vmatpush3.bf16.msra.mxu0 %v2143_v47  ;;  %v2153_v59 = vld [vmem:[#allocation3] sm:$0xff]  }
 0x30e   :  { %v1061_v49 = vpop.f32.mrf.mxu0  ;;  %1986 = vmatprep.subr.bf16.mxu0 %v2386_v31 }
 0x30f   :  { %1091 = vst [vmem:[#allocation2 + $0x10] sm:$0xf] %v1747_v48  ;;  %v1752_v50 = vpack.c.bf16 %v1061_v49, %v1061_v49 }
 0x310   :  { %v1063_v51 = vpop.f32.mrf.mxu0 }
 0x311   :  { %1117 = vst [vmem:[#allocation3 + $0x10] sm:$0xf] %v1752_v50 }
 0x312   :  { %v1064_v52 = vpop.f32.mrf.mxu0  ;;  %v2146_v53 = vld [vmem:[#allocation2 + $0x18] sm:$0xff]   ;;  %v2150_v56 = vld [vmem:[#allocation2 + $0x8] sm:$0xff]  }
 0x313   :  { %1987 = vmatpush3.bf16.msra.mxu0 %v2146_v53 }
 0x314   :  { %1988 = vmatprep.subr.bf16.mxu0 %v2386_v31  ;;  %v2151_v57 = vld [vmem:[#allocation3 + $0x8] sm:$0xff]  }
 0x316   :  { %v2148_v54 = vld [vmem:[#allocation2 + $0x10] sm:$0xff]  }
 0x317   :  { %1989 = vmatpush3.bf16.msra.mxu0 %v2148_v54 }
 0x318   :  { %v2149_v55 = vld [vmem:[#allocation3 + $0x10] sm:$0xff]   ;;  %1990 = vmatprep.subr.bf16.mxu0 %v2386_v31 }
 0x319   :  { %2016 = vmatprep.subr.bf16.mxu1 %v2149_v55 }
 0x31a   :  { %2017 = vmatpush3.bf16.msra.mxu1 %v2149_v55 }
 0x31b   :  { %1991 = vmatpush3.bf16.msra.mxu0 %v2150_v56  ;;  %2018 = vmatprep.subr.bf16.mxu1 %v2151_v57 }
 0x31c   :  { %1992 = vmatprep.subr.bf16.mxu0 %v2386_v31 }
 0x31e   :  { %2019 = vmatpush3.bf16.msra.mxu1 %v2151_v57 }
 0x31f   :  { %1993 = vmatpush3.bf16.msra.mxu0 %v2152_v58  ;;  %2020 = vmatprep.subr.bf16.mxu1 %v2153_v59 }
 0x322   :  { %1995 = vmatmul.mubr.bf16.vlgmr.msra.gmra.mxu0 %v2154_v60  ;;  %2021 = vmatpush3.bf16.msra.mxu1 %v2153_v59 }
 0x323   :  { %1998 = vmatprep.mubr.msk.bf16.mxu0 %vm2387_vm0, %v2386_v31 }
 0x325   :  { %2023 = vmatmul.mubr.bf16.vlgmr.msra.gmra.mxu1 %v2156_v61 }
 0x32a   :  { %1999 = vmatmul.mubr.bf16.gmra.mxu0 %v2157_v62 }
 0x32b   :  { %2002 = vmatprep.mubr.msk.bf16.mxu0 %vm2387_vm0, %v2386_v31 }
 0x332   :  { %2003 = vmatmul.mubr.bf16.gmra.mxu0 %v2158_v63 }
 0x3e2   :  { %v1385_v2 = vpop.f32.mrf.mxu0 }
 0x3e3   :  { %v1386_v3 = vadd.f32 %v1699_v1, %v1385_v2 }
 0x3e4   :  { %v1996_v5 = vpop.f32.mrf.mxu0 }
 0x3e5   :  { %1407 = vst [vmem:[#allocation20] sm:$0xff] %v1386_v3  ;;  %v2024_v6 = vpop.f32.mrf.mxu1 }
 0x3e6   :  { %v1388_v7 = vpop.f32.mrf.mxu0  ;;  %v1539_v8 = vadd.f32 %v2024_v6, %v1711_v4 }
 0x3e7   :  { %v1389_v9 = vadd.f32 %v1699_v1, %v1388_v7  ;;  %v1530_v10 = vpop.f32.mrf.mxu1 }
 0x3e8   :  { %v1997_v31 = vpop.f32.mrf.mxu0  ;;  %1546 = vst [vmem:[#allocation21 + $0x10] sm:$0xff] %v1539_v8  ;;  %v1531_v11 = vadd.f32 %v1711_v4, %v1530_v10 }
 0x3e9   :  { %1408 = vst [vmem:[#allocation20 + $0x8] sm:$0xff] %v1389_v9  ;;  %v2025_v12 = vpop.f32.mrf.mxu1 }
 0x3ea   :  { %v1393_v13 = vpop.f32.mrf.mxu0  ;;  %1544 = vst [vmem:[#allocation21] sm:$0xff] %v1531_v11 }
 0x3eb   :  { %v1394_v14 = vadd.f32 %v1699_v1, %v1393_v13  ;;  %v1533_v15 = vpop.f32.mrf.mxu1 }
 0x3ec   :  { %v2000_v16 = vpop.f32.mrf.mxu0  ;;  %v1534_v17 = vadd.f32 %v1711_v4, %v1533_v15 }
 0x3ed   :  { %1409 = vst [vmem:[#allocation20 + $0x10] sm:$0xff] %v1394_v14 }
 0x3ee   :  { %v1396_v18 = vpop.f32.mrf.mxu0  ;;  %1545 = vst [vmem:[#allocation21 + $0x8] sm:$0xff] %v1534_v17 }
 0x3ef   :  { %v1397_v19 = vadd.f32 %v1699_v1, %v1396_v18 }
 0x3f0   :  { %2330 = shalt.err (!%p2327_p2)
}
 0x3f1   :  { %1570 = dma.vmem_to_hbm [thread:$0]  %s1565_s10, 384, %s2611_s13, [#allocation22], %s2381_s19, %s2381_s19, %s2382_s20   ;;  %v2001_v20 = vpop.f32.mrf.mxu0  ;;  %1410 = vst [vmem:[#allocation20 + $0x18] sm:$0xff] %v1397_v19 }
 0x3f2   :  { %s2389_s18 = smov [#allocation20]  }
 0x3f3   :  { %s1552_s0 = sshll.u32 %s2389_s18, 4  ;;  %v1401_v21 = vpop.f32.mrf.mxu0  ;;  %s1553_s0 = int_to_ptr.vmem [resolvable:$true] %s1552_s0 }
 0x3f4   :  { %v1402_v22 = vadd.f32 %v1699_v1, %v1401_v21  ;;  %s2339_s21 = scalar_lea.vmem %s1553_s0, 640  ;;  %p2344_p4 = scmp.lt.s32.totalorder %s1553_s0, %s1553_s0 }
 0x3f5   :  { %v2004_v23 = vpop.f32.mrf.mxu0  ;;  %p2340_p3 = scmp.ne.s32.totalorder %s1553_s0, %s2339_s21  ;;  %p2345_p5 = scmp.lt.s32.totalorder %s2339_s21, %s2339_s21 }
 0x3f6   :  { %1411 = vst [vmem:[#allocation20 + $0x20] sm:$0xff] %v1402_v22 }
 0x3f7   :  { %v1404_v0 = vpop.f32.mrf.mxu0  ;;  %p2346_p6 = por %p2345_p5, %p2344_p4 }
 0x3f9   :  { %p2347_p7 = pnand %p2346_p6, %p2340_p3 }
 0x3fb   :  { %2350 = shalt.err (!%p2347_p7)
}
 0x3fc   :  { %1558 = dma.vmem_to_hbm [thread:$0]  %s1553_s0, 640, %s2610_s12, [#allocation8], %s2381_s19, %s2381_s19, %s2382_s20   ;;  %v2005_v24 = vpop.f32.mrf.mxu0 }
 0x3fd   :  { %2369 = dma.done.wait [#allocation8], 640  }
 0x3fe   :  { %2370 = vsyncadd [#allocation8], 4294966656 }
 0x3ff   :  { %2371 = dma.done.wait [#allocation22], 384  }
 0x400   :  { %2372 = vsyncadd [#allocation22], 4294966912 }
 0x401   :  { %1577 = vsyncpa [#allocation7], 1 }
 0x402   :  { %1578 = vsyncpa [#allocation10], 1 }
 0x403   :  { %1579 = vsyncpa [#allocation13], 1 }
 0x404   :  { %1580 = vsyncpa [#allocation16], 1 }
 0x405   :  { %1581 = vsyncpa [#allocation19], 1 }
 0x406   :  { %1582 = vsyncpa [#allocation8], 1 }
 0x407   :  { %1583 = vsyncpa [#allocation22], 1 }

</bundles_post_ra>
